<compile_context>
chip_gen: v6e
topology: v6e:2x2x1
jax: 0.10.0
libtpu: 0.0.40
codegen_flags: <defaults>
</compile_context>

<pallas_src>
import math

import jax
import jax.numpy as jnp
from jax import lax
from jax.experimental import pallas as pl
from jax.experimental.pallas import tpu as pltpu


def _vmem_budget_bytes():
    """Generation-aware scoped-VMEM budget (v7x: 48 MiB, v5e/v6e: 64 MiB)."""
    try:
        cap = int(pltpu.get_tpu_info().vmem_capacity_bytes)
    except Exception:  # interpret mode / CPU tracing / older jax
        cap = 128 << 20
    return max(32 << 20, min(64 << 20, cap - (16 << 20)))


def _choose_lanes(p, max_lanes=4096):
    """Largest multiple of 128 (<= max_lanes) dividing p (requires p % 128 == 0)."""
    cand = min(max_lanes, p)
    cand -= cand % 128
    while cand >= 128:
        if p % cand == 0:
            return cand
        cand -= 128
    return 128


def _make_split_kernel(out_dtype):
    # Grid (2N, row_tiles): leading axis folds (batch, half) -> even extent,
    # balanced 2-TensorCore sharding on v7x.
    def kernel(s_ref, x_ref, o_ref):
        h = pl.program_id(0) % 2                 # 0 = real half, 1 = imag half
        a = s_ref[h].astype(out_dtype)           # free scalar SMEM read
        x = x_ref[...]
        o_ref[...] = jnp.maximum(x, 0) + a * jnp.minimum(x, 0)
    return kernel


def _make_interleaved_kernel(out_dtype):
    # Block (BN, 2, BP): axis 1 is real/imag; slope selected per sublane
    # position with an iota mask (ragged shapes, single pass, no pad).
    def kernel(s_ref, x_ref, o_ref):
        x = x_ref[...]
        a_r = s_ref[0].astype(out_dtype)
        a_i = s_ref[1].astype(out_dtype)
        half = lax.broadcasted_iota(jnp.int32, x.shape, 1)
        a = jnp.where(half == 0, a_r, a_i)
        o_ref[...] = jnp.maximum(x, 0) + a * jnp.minimum(x, 0)
    return kernel


def cprelu(x, alpha_r, alpha_i, complex_axis=1, donate_input=False):
    """Complex PReLU, split along the channel axis (axis 1)."""
    assert complex_axis == 1, "kernel implemented for channel-axis split"
    shape = x.shape
    assert x.ndim >= 2, "expect (N, C, ...) input"
    N, C = shape[0], shape[1]
    assert C % 2 == 0, "channel count must be even (real/imag halves)"
    rest = math.prod(shape[2:]) if x.ndim > 2 else 1
    P = (C // 2) * rest                          # contiguous payload per half
    dtype = x.dtype
    itemsize = jnp.dtype(dtype).itemsize
    sublane = {4: 8, 2: 16, 1: 32}.get(itemsize, 8)

    budget = _vmem_budget_bytes()
    # ~8 MiB blocks; 2x(in)+2x(out) double buffering stays well under budget.
    dense_block_bytes = min(8 << 20, budget // 6)

    # Per-half slopes as SMEM scalars (no per-row broadcast column / 2nd DMA).
    slopes = jnp.stack([jnp.asarray(alpha_r, jnp.float32).reshape(()),
                        jnp.asarray(alpha_i, jnp.float32).reshape(())])

    cost = pl.CostEstimate(flops=2 * x.size, transcendentals=0,
                           bytes_accessed=2 * x.size * itemsize)
    aliases = {1: 0} if donate_input else {}

    if P % 128 == 0:
        # ---- dense path: (2N, rows, LANES) view, lane-dense unmasked blocks --
        LANES = _choose_lanes(P)
        rows = P // LANES
        tr_target = max(sublane, dense_block_bytes // (LANES * itemsize))
        tr_target -= tr_target % sublane
        TR = rows if rows <= tr_target else tr_target   # full dim or 8-multiple
        rt = pl.cdiv(rows, TR)                          # partial last row-block OK
        x3 = x.reshape(2 * N, rows, LANES)              # pure view, no copy
        block = (1, TR, LANES)
        idx = lambda g, r: (g, r, 0)

        out = pl.pallas_call(
            _make_split_kernel(dtype),
            out_shape=jax.ShapeDtypeStruct((2 * N, rows, LANES), dtype),
            grid=(2 * N, rt),
            in_specs=[pl.BlockSpec(memory_space=pltpu.MemorySpace.SMEM),  # slopes
                      pl.BlockSpec(block, idx)],
            out_specs=pl.BlockSpec(block, idx),
            compiler_params=pltpu.CompilerParams(
                dimension_semantics=("parallel", "parallel"),
                vmem_limit_bytes=budget),
            cost_estimate=cost,
            input_output_aliases=aliases,
        )(slopes, x3)
        return out.reshape(shape)

    # ---- ragged path: single pass, tail handled by Pallas partial blocks ----
    x3 = x.reshape(N, 2, P)                             # pure view, no copy
    # The (·, 2, BP) VMEM buffer may be sublane-padded (2 -> sublane), so
    # budget the block payload conservatively.
    pad_factor = max(1, sublane // 2)
    ragged_block_bytes = max(2 * 128 * itemsize, budget // (8 * pad_factor))
    if P >= 128:
        bp_cap = max(128, (ragged_block_bytes // (2 * itemsize)) // 128 * 128)
        BP = min((P // 128) * 128, bp_cap)              # multiple of 128, <= P
    else:
        BP = P                                          # full (ragged) extent
    per_n_bytes = 2 * BP * itemsize
    BN = max(1, min(N, ragged_block_bytes // per_n_bytes))
    nb = pl.cdiv(N, BN)
    pb = pl.cdiv(P, BP)
    block = (BN, 2, BP)
    idx = lambda i: (i // pb, 0, i % pb)                # flat grid -> even 2-TC split

    out = pl.pallas_call(
        _make_interleaved_kernel(dtype),
        out_shape=jax.ShapeDtypeStruct((N, 2, P), dtype),
        grid=(nb * pb,),
        in_specs=[pl.BlockSpec(memory_space=pltpu.MemorySpace.SMEM),      # slopes
                  pl.BlockSpec(block, idx)],
        out_specs=pl.BlockSpec(block, idx),
        compiler_params=pltpu.CompilerParams(
            dimension_semantics=("parallel",),
            vmem_limit_bytes=budget),
        cost_estimate=cost,
        input_output_aliases=aliases,
    )(slopes, x3)
    return out.reshape(shape)


def cprelu_ref(x, alpha_r, alpha_i, complex_axis=1):
    """Pure-JAX reference matching the PyTorch forward."""
    real, imag = jnp.split(x, 2, axis=complex_axis)
    real = jnp.maximum(real, 0) + alpha_r * jnp.minimum(real, 0)
    imag = jnp.maximum(imag, 0) + alpha_i * jnp.minimum(imag, 0)
    return jnp.concatenate([real, imag], axis=complex_axis)


if __name__ == "__main__":
    key = jax.random.PRNGKey(0)

    # Module-default shapes / params (nn.PReLU() init weight = 0.25).
    N, C, H, W = 2, 4, 16, 16
    x = jax.random.normal(key, (N, C, H, W), dtype=jnp.float32)
    alpha_r, alpha_i = 0.25, 0.25
    ref = cprelu_ref(x, alpha_r, alpha_i)
    out = jax.block_until_ready(cprelu(x, alpha_r, alpha_i))
    assert out.shape == (N, C, H, W)
    assert jnp.allclose(out, ref, atol=1e-6, rtol=1e-6)

    # Distinct slopes + ragged spatial size: exercises the single-pass
    # interleaved path (half*H*W not a multiple of 128) and input donation
    # (ref computed first, x2 not reused afterwards).
    x2 = jax.random.normal(jax.random.PRNGKey(1), (2, 6, 15, 15), dtype=jnp.float32)
    ref2 = cprelu_ref(x2, 0.1, 0.7)
    out2 = jax.block_until_ready(cprelu(x2, 0.1, 0.7, donate_input=True))
    assert out2.shape == (2, 6, 15, 15)
    assert jnp.allclose(out2, ref2, atol=1e-6, rtol=1e-6)

    print("KERNEL_OK")
</pallas_src>

<mosaic_0001>
module attributes {stable_mosaic.version = 11 : i64} {
  func.func @kernel(%arg0: i32, %arg1: i32, %arg2: memref<2xf32, #tpu.memory_space<smem>>, %arg3: memref<1x1x512xf32, #tpu.memory_space<vmem>>, %arg4: memref<1x1x512xf32, #tpu.memory_space<vmem>>) attributes {dimension_semantics = [#tpu.dimension_semantics<parallel>, #tpu.dimension_semantics<parallel>], iteration_bounds = array<i64: 4, 1>, scalar_prefetch = 0 : i64, scratch_operands = 0 : i64, tpu.core_type = #tpu.core_type<tc>, window_params = [{transform_indices = @transform_0, window_bounds = array<i64: 2>}, {transform_indices = @transform_1, window_bounds = array<i64: 1, 1, 512>}, {transform_indices = @transform_2, window_bounds = array<i64: 1, 1, 512>}]} {
    %c2_i32 = arith.constant 2 : i32
    %c0_i32 = arith.constant 0 : i32
    %0 = arith.cmpi eq, %c2_i32, %c0_i32 : i32
    %c1_i32 = arith.constant 1 : i32
    %1 = arith.select %0, %c1_i32, %c2_i32 : i32
    %2 = arith.remsi %arg0, %1 : i32
    %c0_i32_0 = arith.constant 0 : i32
    %3 = arith.cmpi ne, %2, %c0_i32_0 : i32
    %c0_i32_1 = arith.constant 0 : i32
    %4 = arith.cmpi slt, %2, %c0_i32_1 : i32
    %c0_i32_2 = arith.constant 0 : i32
    %5 = arith.cmpi slt, %1, %c0_i32_2 : i32
    %6 = arith.xori %4, %5 : i1
    %7 = arith.andi %6, %3 : i1
    %8 = arith.addi %2, %1 : i32
    %9 = arith.select %7, %8, %2 : i32
    %10 = arith.index_cast %9 : i32 to index
    %11 = memref.load %arg2[%10] : memref<2xf32, #tpu.memory_space<smem>>
    %c0 = arith.constant 0 : index
    %c0_3 = arith.constant 0 : index
    %c0_4 = arith.constant 0 : index
    %12 = vector.load %arg3[%c0, %c0_3, %c0_4] : memref<1x1x512xf32, #tpu.memory_space<vmem>>, vector<1x1x512xf32>
    %cst = arith.constant 0.000000e+00 : f32
    %13 = vector.broadcast %cst : f32 to vector<1x1x512xf32>
    %14 = arith.maximumf %12, %13 : vector<1x1x512xf32>
    %cst_5 = arith.constant 0.000000e+00 : f32
    %15 = vector.broadcast %cst_5 : f32 to vector<1x1x512xf32>
    %16 = arith.minimumf %12, %15 : vector<1x1x512xf32>
    %17 = vector.broadcast %11 : f32 to vector<1x1x512xf32>
    %18 = arith.mulf %17, %16 : vector<1x1x512xf32>
    %19 = arith.addf %14, %18 : vector<1x1x512xf32>
    %c0_6 = arith.constant 0 : index
    %c0_7 = arith.constant 0 : index
    %c0_8 = arith.constant 0 : index
    %20 = vector.load %arg4[%c0_6, %c0_7, %c0_8] : memref<1x1x512xf32, #tpu.memory_space<vmem>>, vector<1x1x512xf32>
    tpu.vector_store %arg4[%c0_6, %c0_7, %c0_8], %19 {strides = array<i32>} : memref<1x1x512xf32, #tpu.memory_space<vmem>>, vector<1x1x512xf32>,
    return
  }
  func.func @transform_0(%arg0: i32, %arg1: i32) -> i32 {
    %c0_i32 = arith.constant 0 : i32
    %c0_i32_0 = arith.constant 0 : i32
    return %c0_i32 : i32
  }
  func.func @transform_1(%arg0: i32, %arg1: i32) -> (i32, i32, i32) {
    %c0_i32 = arith.constant 0 : i32
    %c0_i32_0 = arith.constant 0 : i32
    return %arg0, %arg1, %c0_i32 : i32, i32, i32
  }
  func.func @transform_2(%arg0: i32, %arg1: i32) -> (i32, i32, i32) {
    %c0_i32 = arith.constant 0 : i32
    %c0_i32_0 = arith.constant 0 : i32
    return %arg0, %arg1, %c0_i32 : i32, i32, i32
  }
}

</mosaic_0001>

<bundles_post_ra>
// kernel: tpu_custom_call.1
= control target key start
LH: loop header
LB: loop body
LE: loop exit
PB: predicated region body
PF: predicated region fallthrough
CT: control target
= control target key end

     0   :  { %7 = vsyncpa [#allocation5], 0  ;;  %s731_s0 = inlined_call_operand.hbm [shape: f32[2], index: 0, kind: input, shape index: {}]   ;;  %s732_s1 = inlined_call_operand.hbm [shape: f32[4,1,512], index: 1, kind: input, shape index: {}]   ;;  %s733_s2 = inlined_call_operand.hbm [shape: f32[4,1,512], index: 2, kind: output, shape index: {}]  }
   0x1   :  { %8 = vsyncpa [#allocation3], 0 }
   0x2   :  { %10 = vsyncpa [#allocation3 + $0x1], 0 }
   0x3   :  { %11 = vsyncpa [#allocation4], 0 }
   0x4   :  { %13 = vsyncpa [#allocation4 + $0x1], 0  ;;  %s565_s9 = smov 0   ;;  %s567_s10 = smov 0  }
   0x5   :  { %s569_s11 = smov 0   ;;  %s571_s12 = smov 0  }
   0x6   :  { %s573_s13 = smov 0   ;;  %s575_s14 = smov 0  }
   0x7 LB: > { %s327_s15 = sadd.s32 4294967295, %s545_s14   ;;  %s328_s16 = sadd.s32 4294967294, %s545_s14   ;;  %s545_s14 = sphi %s575_s14, %s19_s14   ;;  %s541_s13 = sphi %s573_s13, %s749_s13   ;;  %s537_s12 = sphi %s571_s12, %s748_s12   ;;  %s533_s11 = sphi %s569_s11, %s747_s11   ;;  %s529_s10 = sphi %s567_s10, %s746_s10   ;;  %s525_s9 = sphi %s565_s9, %s745_s9  }
   0x8   : > { %p74_p0 = scmp.ne.s32.totalorder %s529_s10, %s525_s9  ;;  %p599_p1 = scmp.eq.s32.totalorder %s327_s15, 0 }
   0x9   : > { %p603_p2 = scmp.eq.s32.totalorder %s327_s15, 3  ;;  %p106_p3 = scmp.eq.s32.totalorder %s328_s16, 3 }
   0xa   : > { %p609_p4 = por %p599_p1, %p74_p0  ;;  %p329_p5 = scmp.ge.s32.totalorder %s545_s14, 1 }
   0xb   : > { %p614_p6 = por %p106_p3, %p74_p0  ;;  %p113_p7 = scmp.lt.s32.totalorder %s545_s14, 5 }
   0xc   : > { %s31_s22 = sadd.s32 1, %s541_s13  ;;  %s61_s23 = sadd.s32 1, %s533_s11 }
   0xd   : > { %s738_s20 = scalar_select %p614_p6, 1, 0 }
   0xe   : > { %p619_p8 = pnand %p329_p5, %p113_p7  ;;  %p33_p11 = scmp.ge.s32.totalorder %s31_s22, 4 }
   0xf   : > { %p68_p12 = scmp.ne.s32.totalorder %s533_s11, %s529_s10  ;;  %p69_p13 = scmp.eq.s32.totalorder %s545_s14, 0 }
  0x10   : > { %p357_p9 = pneg %p619_p8  ;;  %s547_s24 = smov [#allocation2]  }
  0x11   : > { %s751_s22 = smov (%p33_p11, %s31_s22), 0  ;;  %p637_p0 = por %p69_p13, %p68_p12 }
  0x12   : > { %p358_p10 = pnand %p357_p9, %p599_p1  ;;  %p643_p3 = por %p603_p2, %p68_p12 }
  0x13   : > { %s56_s29 = ssub.s32 %s541_s13, %s751_s22  ;;  %p370_p5 = scmp.lt.s32.totalorder %s545_s14, 4 }
  0x14   : > { %360 = dma.hbm_to_smem (!%p358_p10), %s731_s0, 16, %s547_s24, [#allocation5]  }
  0x15   : > { %s741_s28 = scalar_select %p643_p3, 1, 0 }
  0x16   : > { %p59_p7 = scmp.eq.s32.totalorder %s56_s29, 0  ;;  %s135_s30 = sand.u32 1, %s533_s11  }
  0x17   : > { %s332_s3 = sshll.u32 %s135_s30, 2  ;;  %s347_s5 = sshll.u32 %s541_s13, 6 }
  0x18   : > { %s652_s4 = scalar_select %p59_p7, %s533_s11, %s61_s23  }
  0x19   : > { %s147_s8 = scalar_lea.hbm %s732_s1, %s347_s5  ;;  %s139_s15 = scalar_lea.vmem [#allocation6], %s332_s3 }
  0x1a   : > { %s149_s16 = sshll.u32 %s139_s15, 4  ;;  %p660_p2 = pnand %p370_p5, %p637_p0  ;;  %s150_s16 = int_to_ptr.vmem [resolvable:$true] %s149_s16 }
  0x1b   : > { %s136_s24 = scalar_lea.sflag [#allocation3], %s135_s30  ;;  %s446_s25 = scalar_lea.vmem %s150_s16, 64 }
  0x1c   : > { %p435_p9 = pneg %p660_p2  ;;  %p447_p10 = scmp.ne.s32.totalorder %s150_s16, %s446_s25 }
  0x1d   : > { %s548_s23 = smov [#allocation6]  }
  0x1e   : > { %p449_p11 = pnand %p447_p10, %p435_p9  ;;  %s451_s26 = sshll.u32 %s548_s23, 4  ;;  %s452_s26 = int_to_ptr.vmem [resolvable:$false] %s451_s26 }
  0x1f   : > { %s453_s29 = scalar_lea.vmem %s452_s26, 128  ;;  %p454_p13 = scmp.lt.s32.totalorder %s150_s16, %s452_s26 }
  0x20   : > { %p450_p12 = pneg %p449_p11  ;;  %p455_p7 = scmp.lt.s32.totalorder %s453_s29, %s446_s25 }
  0x22   : > { %p456_p6 = por %p455_p7, %p454_p13 }
  0x24   : > { %p457_p3 = pnand %p456_p6, %p450_p12 }
  0x26   : > { %460 = shalt.err (!%p457_p3)
}
  0x27   : > { %364 = dma.hbm_to_vmem [thread:$0]  (!%p660_p2), %s147_s8, 64, %s150_s16, %s136_s24  }
  0x28   : > { %158 = sbr.rel (%p619_p8) target bundleno = 84 (0x54), region = 28 }
  0x2d   : > { %512 = dma.done.wait (%p599_p1), [#allocation5], 16  }
  0x2e   : > { %514 = vsyncadd (%p599_p1), [#allocation5], 4294967280  ;;  %s675_s27 = sand.u32 1, %s529_s10  }
  0x2f   : > { %s337_s30 = sshll.u32 %s675_s27, 2  ;;  %s165_s3 = scalar_lea.sflag [#allocation3], %s675_s27 }
  0x30   : > { %s168_s5 = scalar_lea.vmem [#allocation6], %s337_s30 }
  0x31   : > { %516 = dma.done.wait (%p609_p4), %s165_s3, 64  }
  0x32   : > { %518 = vsyncadd (%p609_p4), %s165_s3, 4294967232 }
  0x33   : > { %173 = sfence }
  0x34   : > { %p190_p6 = scmp.lt.s32.totalorder %s537_s12, 0  ;;  %s191_s17 = ssub.s32 0, %s537_s12  ;;  %v203_v0 = vld [vmem:[%s168_s5] sm:$0xf]  ;;  %v209_v2 = vlaneseq }
  0x35   : > { %s339_s21 = smin.u32 %s537_s12, %s191_s17  ;;  %v205_v1 = vmin.f32 %v203_v0, 0.0  ;;  %v204_v3 = vmax.f32 %v203_v0, 0.0  ;;  %s189_s19 = scalar_lea.vmem [#allocation7], %s337_s30 }
  0x36   : > { %s193_s6 = sand.u32 1, %s339_s21   ;;  %s231_s16 = sshll.u32 %s189_s19, 4  ;;  %vm211_vm0 = vcmp.lt.s32.totalorder %v209_v2, 512  ;;  %s687_s16 = int_to_ptr.vmem [resolvable:$true] %s231_s16 }
  0x37   : > { %s194_s7 = ssub.s32 0, %s193_s6  ;;  %s348_s18 = sshll.u32 %s537_s12, 6 }
  0x38   : > { %s753_s7 = smov (!%p190_p6, %s194_s7), %s193_s6  ;;  %s229_s23 = scalar_lea.hbm %s733_s2, %s348_s18 }
  0x39   : > { %p341_p1 = scmp.lt.s32.totalorder %s753_s7, 0  ;;  %s200_s8 = sadd.s32 2, %s753_s7 }
  0x3a   : > { %s215_s26 = scalar_lea.sflag [#allocation4], %s675_s27  ;;  %s461_s29 = scalar_lea.vmem %s687_s16, 64 }
  0x3b   : > { %s755_s8 = smov (!%p341_p1, %s200_s8), %s753_s7  ;;  %p462_p4 = scmp.ne.s32.totalorder %s687_s16, %s461_s29 }
  0x3c   : > { %s202_s15 = sld [smem:[#allocation2 + %s755_s8]]  ;;  %p743_p8 = scmp.ne.s32.totalorder %s741_s28, 0 }
  0x3d   : > { %s549_s12 = smov [#allocation7]  }
  0x3e   : > { %p463_p0 = pnand %p462_p4, %p743_p8  ;;  %s465_s30 = sshll.u32 %s549_s12, 4  ;;  %s466_s30 = int_to_ptr.vmem [resolvable:$false] %s465_s30 }
  0x3f   : > { %s467_s3 = scalar_lea.vmem %s466_s30, 128  ;;  %p468_p5 = scmp.lt.s32.totalorder %s687_s16, %s466_s30 }
  0x40   : > { %p464_p3 = pneg %p463_p0  ;;  %p469_p2 = scmp.lt.s32.totalorder %s467_s3, %s461_s29 }
  0x42   : > { %v206_v4 = vstv %s202_s15  ;;  %p470_p9 = por %p469_p2, %p468_p5 }
  0x43   : > { %v207_v5 = vmul.f32 %v206_v4, %v205_v1 }
  0x44   : > { %p471_p10 = pnand %p470_p9, %p464_p3 }
  0x45   : > { %v208_v6 = vadd.f32 %v207_v5, %v204_v3 }
  0x47   : > { %213 = vst.msk [vmem:[%s189_s19] sm:$0xf] %vm211_vm0, %v208_v6 }
  0x48   : > { %474 = shalt.err (!%p471_p10)
}
  0x49   : > { %s475_s5 = scalar_lea.hbm %s229_s23, 64  ;;  %s479_s21 = scalar_lea.hbm %s733_s2, 256 }
  0x4a   : > { %p476_p11 = scmp.ne.s32.totalorder %s229_s23, %s475_s5  ;;  %p480_p7 = scmp.lt.s32.totalorder %s229_s23, %s733_s2 }
  0x4b   : > { %p481_p6 = scmp.lt.s32.totalorder %s479_s21, %s475_s5 }
  0x4c   : > { %p477_p12 = pnand %p476_p11, %p743_p8 }
  0x4d   : > { %p482_p1 = por %p481_p6, %p480_p7 }
  0x4e   : > { %p478_p13 = pneg %p477_p12 }
  0x50   : > { %p483_p4 = pnand %p482_p1, %p478_p13 }
  0x52   : > { %486 = shalt.err (!%p483_p4)
}
  0x53   : > { %355 = dma.vmem_to_hbm [thread:$0]  (%p743_p8), %s687_s16, 64, %s229_s23, %s215_s26  }
  0x54 PF: > { %p372_p0 = scmp.ge.s32.totalorder %s545_s14, 2  ;;  %s243_s8 = sand.u32 1, %s525_s9  }
  0x55   : > { %p744_p3 = scmp.ne.s32.totalorder %s738_s20, 0  ;;  %s244_s15 = scalar_lea.sflag [#allocation4], %s243_s8 }
  0x57   : > { %p366_p5 = pnand %p372_p0, %p744_p3 }
  0x59   : > { %p367_p2 = pneg %p366_p5 }
  0x5b   : > { %520 = dma.done.wait (%p367_p2), %s244_s15, 64  }
  0x5c   : > { %522 = vsyncadd (%p367_p2), %s244_s15, 4294967232  ;;  %s19_s14 = sadd.s32 1, %s545_s14   ;;  %s745_s9 = smov %s529_s10 }
  0x5d   : > { %p16_p9 = scmp.ge.s32.totalorder %s19_s14, 6   ;;  %s746_s10 = smov %s533_s11 }
  0x5e   : > { %s747_s11 = smov %s652_s4  ;;  %s748_s12 = smov %s541_s13 }
  0x5f   : > { %s749_s13 = smov %s751_s22  ;;  %18 = sbr.rel (!%p16_p9) target bundleno = 7 (0x7), region = 78 }
  0x64   :  { %249 = vsyncpa [#allocation3], 1 }
  0x65   :  { %251 = vsyncpa [#allocation3 + $0x1], 1 }
  0x66   :  { %252 = vsyncpa [#allocation4], 1 }
  0x67   :  { %254 = vsyncpa [#allocation4 + $0x1], 1 }
  0x68   :  { %255 = vsyncpa [#allocation5], 1 }
  0x69   :  { %257 = vsyncpa [#allocation5 + $0x1], 1 }

</bundles_post_ra>
